<compile_context>
chip_gen: v7x
topology: tpu7x:2x2x1
jax: 0.10.0
libtpu: 0.0.40
codegen_flags: <defaults>
</compile_context>

<pallas_src>
import functools

import jax
import jax.numpy as jnp
from jax import lax
from jax.experimental import pallas as pl
from jax.experimental.pallas import tpu as pltpu

# Pad value for non-multiple-of-128 n: exp((_PAD - 1) * scale) == 0 for any realistic
# positive scale, so padded rows/columns contribute exactly nothing to the sums.
_PAD = -1e30


# ----------------------------------------------------------------------------
# Kernel: row-tiled partial reductions.
# Grid = (num_core_splits, tiles_per_core).  Axis 0 is "parallel" (megacore split on
# v7x); axis 1 walks this core's row tiles and carries the accumulators.
# ----------------------------------------------------------------------------
def _clip_loss_partials_kernel(sims_ref, scale_ref, col_out_ref, stats_out_ref,
                               col_acc_ref, stats_ref, *, n_true, tiles_per_core):
    # sims_ref:      (TM, N)    VMEM tile: rows [t*TM, (t+1)*TM) of the padded matrix
    # scale_ref:     (1, 1)     SMEM raw logit_scale (pre-exp)
    # col_out_ref:   (1, 1, N)  VMEM per-core column partial sums of exp(logits - scale)
    # stats_out_ref: (1, 2)     SMEM per-core [sum_i log(row_sum_i), sum_i logits[i, i]]
    # col_acc_ref:   (1, N)     f32 VMEM scratch (running column sums)
    # stats_ref:     (2,)       f32 SMEM scratch (running scalar sums)
    c = pl.program_id(0)
    i = pl.program_id(1)
    tm, n_pad = sims_ref.shape
    t = c * tiles_per_core + i          # global row-tile index
    padded = n_true != n_pad            # trace-time Python bool

    scale = jnp.exp(scale_ref[0, 0].astype(jnp.float32))
    x = sims_ref[...].astype(jnp.float32)

    # Constant-shift exp: logits - scale = (x - 1) * scale, exponent in [-2*scale, 0].
    e = jnp.exp((x - 1.0) * scale)                       # (TM, N), values in [0, 1]

    # Row partials: sum_i log(sum_j e_ij); the "+ scale" shift per real row is added
    # back once in the JAX epilogue (as n_true * scale).
    rs = jnp.sum(e, axis=1, keepdims=True)               # (TM, 1)
    row_log = jnp.log(rs)
    if padded:
        g_row = t * tm + lax.broadcasted_iota(jnp.int32, (tm, 1), 0)
        row_log = jnp.where(g_row < n_true, row_log, 0.0)   # padded rows: rs == 0
    row_log_sum = jnp.sum(row_log)

    # Diagonal of this tile from a (TM, TM) column slice: O(TM^2), not O(TM*N).
    if tm >= 128:
        col_start = pl.multiple_of(t * tm, tm)
        dblk = sims_ref[:, pl.ds(col_start, tm)].astype(jnp.float32) * scale
        r_ii = lax.broadcasted_iota(jnp.int32, (tm, tm), 0)
        c_ii = lax.broadcasted_iota(jnp.int32, (tm, tm), 1)
        d_mask = r_ii == c_ii
        if padded:
            d_mask = d_mask & (t * tm + r_ii < n_true)
        diag_sum = jnp.sum(jnp.where(d_mask, dblk, 0.0))
    else:
        # Tiny-TM fallback (only hit at extreme n): avoid sub-128 lane slices.
        r_ii = t * tm + lax.broadcasted_iota(jnp.int32, (tm, n_pad), 0)
        c_ii = lax.broadcasted_iota(jnp.int32, (tm, n_pad), 1)
        d_mask = r_ii == c_ii
        if padded:
            d_mask = d_mask & (r_ii < n_true)
        diag_sum = jnp.sum(jnp.where(d_mask, x * scale, 0.0))

    # Column partial sums.  Constant shift => the online merge is a plain add.
    # TODO(synk): if the VPU ever becomes the binding slot (v7x), push these two sums
    # through the idle MXU via dot with a ones vector.
    col_partial = jnp.sum(e, axis=0, keepdims=True)      # (1, N)

    @pl.when(i == 0)
    def _init():
        col_acc_ref[...] = col_partial
        stats_ref[0] = row_log_sum
        stats_ref[1] = diag_sum

    @pl.when(i > 0)
    def _accumulate():
        col_acc_ref[...] = col_acc_ref[...] + col_partial
        stats_ref[0] = stats_ref[0] + row_log_sum
        stats_ref[1] = stats_ref[1] + diag_sum

    @pl.when(i == tiles_per_core - 1)
    def _emit():
        col_out_ref[0] = col_acc_ref[...]
        stats_out_ref[0, 0] = stats_ref[0]
        stats_out_ref[0, 1] = stats_ref[1]


# ----------------------------------------------------------------------------
# Wrapper helpers
# ----------------------------------------------------------------------------
def _vmem_capacity_bytes():
    try:
        info = pltpu.get_tpu_info()
        for attr in ("vmem_capacity_bytes", "vmem_size_bytes", "vmem_bytes"):
            val = getattr(info, attr, None)
            if val:
                return int(val)
    except Exception:
        pass
    return 64 * 1024 * 1024      # conservative: assume v7x (smallest VMEM per core)


def _tile_footprint_bytes(tm, n_pad, itemsize):
    # double-buffered input tile + double-buffered (1, N) col output block
    # + (1, N) col accumulator scratch + slack for small buffers.
    return 2 * tm * n_pad * itemsize + 3 * n_pad * 4 + (256 << 10)


def _choose_tile_rows(n_pad, itemsize, max_tile_rows, budget_bytes):
    """Largest row tile (multiple of 8, divides n_pad) whose pipelined footprint fits."""
    for cand in (1024, 512, 256, 128, 64, 32, 16, 8):
        if cand > max_tile_rows or n_pad % cand:
            continue
        if _tile_footprint_bytes(cand, n_pad, itemsize) <= budget_bytes:
            return cand
    # TODO(synk): add a second (column) grid axis for n so large that even an 8-row
    # full-width tile cannot double-buffer in VMEM.
    return 8


# ----------------------------------------------------------------------------
# Public entry point
# ----------------------------------------------------------------------------
@functools.partial(
    jax.jit,
    static_argnames=("max_tile_rows", "vmem_budget_bytes", "num_core_splits"))
def clip_loss(sims: jax.Array, logit_scale: jax.Array, *,
              max_tile_rows: int | None = None,
              vmem_budget_bytes: int | None = None,
              num_core_splits: int = 2) -> jax.Array:
    """CLIP contrastive loss.

    sims: (n, n) cosine similarities (text = dim-0), logit_scale: (1, 1) pre-exp.
    Returns a scalar float32 loss identical to the PyTorch module's forward.
    """
    assert sims.ndim == 2 and sims.shape[0] == sims.shape[1], sims.shape
    n = sims.shape[0]
    logit_scale = jnp.asarray(logit_scale, dtype=jnp.float32).reshape(1, 1)

    # Generation-aware knobs: v5e/v6e have 128 MiB VMEM, v7x has 64 MiB per core.
    capacity = _vmem_capacity_bytes()
    big_vmem = capacity >= 96 * 1024 * 1024
    if vmem_budget_bytes is None:
        vmem_budget_bytes = (56 if big_vmem else 40) * 1024 * 1024
    if max_tile_rows is None:
        max_tile_rows = 1024 if big_vmem else 256

    # Pad to a lane multiple; pad value makes exp() exactly 0, and padded rows /
    # diagonal entries are additionally masked in-kernel / in the epilogue.
    n_pad = max(128, ((n + 127) // 128) * 128)
    sims_p = sims
    if n_pad != n:
        sims_p = jnp.pad(sims, ((0, n_pad - n), (0, n_pad - n)), constant_values=_PAD)

    itemsize = jnp.dtype(sims_p.dtype).itemsize
    tm = _choose_tile_rows(n_pad, itemsize, max_tile_rows, vmem_budget_bytes)
    num_tiles = n_pad // tm

    # Split row tiles over a leading "parallel" axis so both TensorCores of a v7x chip
    # work; on 1-TC chips this is the same number of serial grid steps.
    n_splits = num_core_splits if (num_core_splits > 1
                                   and num_tiles >= num_core_splits
                                   and num_tiles % num_core_splits == 0) else 1
    tiles_per_core = num_tiles // n_splits

    vmem_limit = int(min(
        max(_tile_footprint_bytes(tm, n_pad, itemsize) + (4 << 20), 16 << 20),
        max(capacity - (8 << 20), 16 << 20)))

    cost = pl.CostEstimate(
        flops=6 * n_pad * n_pad,
        transcendentals=n_pad * n_pad,
        bytes_accessed=n_pad * n_pad * itemsize + n_splits * (n_pad + 2) * 4 + 8,
    )

    kernel = functools.partial(_clip_loss_partials_kernel,
                               n_true=n, tiles_per_core=tiles_per_core)

    tpc = tiles_per_core

    def _sims_map(c, i):
        return (c * tpc + i, 0)

    def _scalar_map(c, i):
        return (0, 0)

    def _col_out_map(c, i):
        return (c, 0, 0)

    def _stats_out_map(c, i):
        return (c, 0)

    col_parts, stats = pl.pallas_call(
        kernel,
        out_shape=(jax.ShapeDtypeStruct((n_splits, 1, n_pad), jnp.float32),
                   jax.ShapeDtypeStruct((n_splits, 2), jnp.float32)),
        grid_spec=pltpu.PrefetchScalarGridSpec(
            num_scalar_prefetch=0,
            grid=(n_splits, tiles_per_core),
            in_specs=[
                pl.BlockSpec((tm, n_pad), _sims_map),
                pl.BlockSpec((1, 1), _scalar_map,
                             memory_space=pltpu.MemorySpace.SMEM),
            ],
            out_specs=[
                pl.BlockSpec((1, 1, n_pad), _col_out_map),
                pl.BlockSpec((1, 2), _stats_out_map,
                             memory_space=pltpu.MemorySpace.SMEM),
            ],
            scratch_shapes=[
                pltpu.VMEM((1, n_pad), jnp.float32),   # running column sums
                pltpu.SMEM((2,), jnp.float32),         # [sum log row-sums, sum diag]
            ],
        ),
        compiler_params=pltpu.CompilerParams(
            dimension_semantics=("parallel", "arbitrary"),
            vmem_limit_bytes=vmem_limit,
        ),
        cost_estimate=cost,
    )(sims_p, logit_scale)

    # Tiny O(n) epilogue in plain JAX: merge per-core partials, add back the constant
    # shift (scale per real row and per real column), assemble the loss.
    scale = jnp.exp(logit_scale[0, 0])
    col_sum = jnp.sum(col_parts[:, 0, :], axis=0)                     # (n_pad,)
    if n_pad != n:
        valid = jnp.arange(n_pad) < n
        col_log_total = jnp.sum(jnp.where(valid, jnp.log(col_sum), 0.0))
    else:
        col_log_total = jnp.sum(jnp.log(col_sum))
    row_log_total = jnp.sum(stats[:, 0])
    diag_total = jnp.sum(stats[:, 1])
    loss = (row_log_total + col_log_total + 2.0 * n * scale - 2.0 * diag_total) / (2.0 * n)
    return loss.astype(jnp.float32)


# ----------------------------------------------------------------------------
# Plain-JAX reference mirroring the PyTorch module
# ----------------------------------------------------------------------------
def _reference_clip_loss(sims, logit_scale):
    scale = jnp.exp(jnp.asarray(logit_scale, jnp.float32).reshape(1, 1)[0, 0])
    logits = sims.astype(jnp.float32) * scale
    t2v = jax.nn.log_softmax(logits, axis=1)
    v2t = jax.nn.log_softmax(logits, axis=0)
    t2v_loss = -jnp.mean(jnp.diag(t2v))
    v2t_loss = -jnp.mean(jnp.diag(v2t))
    return (t2v_loss + v2t_loss) / 2.0


if __name__ == "__main__":
    key = jax.random.PRNGKey(0)
    keys = jax.random.split(key, 4)
    # standard CLIP logit scale = log(1/0.07)
    logit_scale = jnp.full((1, 1), jnp.log(1.0 / 0.07), dtype=jnp.float32)

    def _check(sims, **kwargs):
        got = jax.block_until_ready(clip_loss(sims, logit_scale, **kwargs))
        want = _reference_clip_loss(sims, logit_scale)
        assert jnp.allclose(got, want, atol=5e-4, rtol=1e-4), (got, want)

    # n=8: the module's toy size; exercises pad-to-128 + row/col/diag masking (grid (1,1)).
    _check(jnp.tanh(jax.random.normal(keys[0], (8, 8), jnp.float32)))
    # n=384: multiple of 128 only -> TM=128, 3 row tiles on one core (accumulate path).
    _check(jnp.tanh(jax.random.normal(keys[1], (384, 384), jnp.float32)))
    # n=512 with TM=128 -> 4 row tiles split 2-ways over the "parallel" axis (grid (2,2)).
    _check(jnp.tanh(jax.random.normal(keys[2], (512, 512), jnp.float32)),
           max_tile_rows=128)
    # bf16 sims: dtype-aware tile budget; in-kernel f32 math.
    _check(jnp.tanh(jax.random.normal(keys[3], (256, 256), jnp.float32)).astype(jnp.bfloat16))

    print("KERNEL_OK")
</pallas_src>

<mosaic_0001>
module attributes {stable_mosaic.version = 11 : i64} {
  func.func @_clip_loss_partials_kernel(%arg0: i32, %arg1: i32, %arg2: memref<128x128xf32, #tpu.memory_space<vmem>>, %arg3: memref<1x1xf32, #tpu.memory_space<smem>>, %arg4: memref<1x1x128xf32, #tpu.memory_space<vmem>>, %arg5: memref<1x2xf32, #tpu.memory_space<smem>>, %arg6: memref<1x128xf32, #tpu.memory_space<vmem>>, %arg7: memref<2xf32, #tpu.memory_space<smem>>) attributes {dimension_semantics = [#tpu.dimension_semantics<parallel>, #tpu.dimension_semantics<arbitrary>], iteration_bounds = array<i64: 1, 1>, scalar_prefetch = 0 : i64, scratch_operands = 2 : i64, tpu.core_type = #tpu.core_type<tc>, window_params = [{transform_indices = @transform_0, window_bounds = array<i64: 128, 128>}, {transform_indices = @transform_1, window_bounds = array<i64: 1, 1>}, {transform_indices = @transform_2, window_bounds = array<i64: 1, 1, 128>}, {transform_indices = @transform_3, window_bounds = array<i64: 1, 2>}]} {
    %c1_i32 = arith.constant 1 : i32
    %0 = arith.muli %arg0, %c1_i32 : i32
    %1 = arith.addi %0, %arg1 : i32
    %c0 = arith.constant 0 : index
    %c0_0 = arith.constant 0 : index
    %2 = memref.load %arg3[%c0, %c0_0] : memref<1x1xf32, #tpu.memory_space<smem>>
    %3 = math.exp %2 : f32
    %c0_1 = arith.constant 0 : index
    %c0_2 = arith.constant 0 : index
    %4 = vector.load %arg2[%c0_1, %c0_2] : memref<128x128xf32, #tpu.memory_space<vmem>>, vector<128x128xf32>
    %cst = arith.constant 1.000000e+00 : f32
    %5 = vector.broadcast %cst : f32 to vector<128x128xf32>
    %6 = arith.subf %4, %5 : vector<128x128xf32>
    %7 = vector.broadcast %3 : f32 to vector<128x128xf32>
    %8 = arith.mulf %6, %7 : vector<128x128xf32>
    %9 = math.exp %8 : vector<128x128xf32>
    %cst_3 = arith.constant dense<0.000000e+00> : vector<128xf32>
    %10 = vector.multi_reduction <add>, %9, %cst_3 [1] : vector<128x128xf32> to vector<128xf32>
    %11 = vector.shape_cast %10 : vector<128xf32> to vector<128x1xf32>
    %12 = math.log %11 : vector<128x1xf32>
    %c128_i32 = arith.constant 128 : i32
    %13 = arith.muli %1, %c128_i32 : i32
    %14 = tpu.iota {dimensions = array<i32: 0>} : vector<128x1xi32>
    %15 = vector.broadcast %13 : i32 to vector<128x1xi32>
    %16 = arith.addi %15, %14 : vector<128x1xi32>
    %c8_i32 = arith.constant 8 : i32
    %17 = vector.broadcast %c8_i32 : i32 to vector<128x1xi32>
    %18 = arith.cmpi slt, %16, %17 : vector<128x1xi32>
    %cst_4 = arith.constant 0.000000e+00 : f32
    %19 = vector.broadcast %cst_4 : f32 to vector<128x1xf32>
    %20 = arith.select %18, %12, %19 : vector<128x1xi1>, vector<128x1xf32>
    %21 = vector.shape_cast %20 : vector<128x1xf32> to vector<1x128x1xf32>
    %cst_5 = arith.constant dense<0.000000e+00> : vector<1xf32>
    %22 = vector.multi_reduction <add>, %21, %cst_5 [1, 2] : vector<1x128x1xf32> to vector<1xf32>
    %23 = vector.shape_cast %22 : vector<1xf32> to vector<1x1x1xf32>
    %24 = vector.extract %23[0, 0, 0] : f32 from vector<1x1x1xf32>
    %c128_i32_6 = arith.constant 128 : i32
    %25 = arith.muli %1, %c128_i32_6 : i32
    %26 = tpu.assume_multiple %25, 128 : i32
    %c0_7 = arith.constant 0 : index
    %27 = arith.index_cast %26 : i32 to index
    %28 = vector.load %arg2[%c0_7, %27] : memref<128x128xf32, #tpu.memory_space<vmem>>, vector<128x128xf32>
    %29 = vector.broadcast %3 : f32 to vector<128x128xf32>
    %30 = arith.mulf %28, %29 : vector<128x128xf32>
    %31 = tpu.iota {dimensions = array<i32: 0>} : vector<128x128xi32>
    %32 = tpu.iota {dimensions = array<i32: 1>} : vector<128x128xi32>
    %33 = arith.cmpi eq, %31, %32 : vector<128x128xi32>
    %c128_i32_8 = arith.constant 128 : i32
    %34 = arith.muli %1, %c128_i32_8 : i32
    %35 = vector.broadcast %34 : i32 to vector<128x128xi32>
    %36 = arith.addi %35, %31 : vector<128x128xi32>
    %c8_i32_9 = arith.constant 8 : i32
    %37 = vector.broadcast %c8_i32_9 : i32 to vector<128x128xi32>
    %38 = arith.cmpi slt, %36, %37 : vector<128x128xi32>
    %39 = arith.andi %33, %38 : vector<128x128xi1>
    %cst_10 = arith.constant 0.000000e+00 : f32
    %40 = vector.broadcast %cst_10 : f32 to vector<128x128xf32>
    %41 = arith.select %39, %30, %40 : vector<128x128xi1>, vector<128x128xf32>
    %42 = vector.shape_cast %41 : vector<128x128xf32> to vector<1x128x128xf32>
    %cst_11 = arith.constant dense<0.000000e+00> : vector<1xf32>
    %43 = vector.multi_reduction <add>, %42, %cst_11 [1, 2] : vector<1x128x128xf32> to vector<1xf32>
    %44 = vector.shape_cast %43 : vector<1xf32> to vector<1x1x1xf32>
    %45 = vector.extract %44[0, 0, 0] : f32 from vector<1x1x1xf32>
    %cst_12 = arith.constant dense<0.000000e+00> : vector<128xf32>
    %46 = vector.multi_reduction <add>, %9, %cst_12 [0] : vector<128x128xf32> to vector<128xf32>
    %47 = vector.shape_cast %46 : vector<128xf32> to vector<1x128xf32>
    %c0_i32 = arith.constant 0 : i32
    %48 = arith.cmpi eq, %arg1, %c0_i32 : i32
    %49 = arith.extui %48 : i1 to i32
    %c0_i32_13 = arith.constant 0 : i32
    %50 = arith.cmpi ne, %49, %c0_i32_13 : i32
    scf.if %50 {
      %c0_18 = arith.constant 0 : index
      %c0_19 = arith.constant 0 : index
      %57 = vector.load %arg6[%c0_18, %c0_19] : memref<1x128xf32, #tpu.memory_space<vmem>>, vector<1x128xf32>
      tpu.vector_store %arg6[%c0_18, %c0_19], %47 {strides = array<i32>} : memref<1x128xf32, #tpu.memory_space<vmem>>, vector<1x128xf32>,
      %c0_20 = arith.constant 0 : index
      %58 = memref.load %arg7[%c0_20] : memref<2xf32, #tpu.memory_space<smem>>
      memref.store %24, %arg7[%c0_20] : memref<2xf32, #tpu.memory_space<smem>>
      %c1 = arith.constant 1 : index
      %59 = memref.load %arg7[%c1] : memref<2xf32, #tpu.memory_space<smem>>
      memref.store %45, %arg7[%c1] : memref<2xf32, #tpu.memory_space<smem>>
    } else {
    }
    %c0_i32_14 = arith.constant 0 : i32
    %51 = arith.cmpi sgt, %arg1, %c0_i32_14 : i32
    %52 = arith.extui %51 : i1 to i32
    %c0_i32_15 = arith.constant 0 : i32
    %53 = arith.cmpi ne, %52, %c0_i32_15 : i32
    scf.if %53 {
      %c0_18 = arith.constant 0 : index
      %c0_19 = arith.constant 0 : index
      %57 = vector.load %arg6[%c0_18, %c0_19] : memref<1x128xf32, #tpu.memory_space<vmem>>, vector<1x128xf32>
      %58 = arith.addf %57, %47 : vector<1x128xf32>
      %c0_20 = arith.constant 0 : index
      %c0_21 = arith.constant 0 : index
      %59 = vector.load %arg6[%c0_20, %c0_21] : memref<1x128xf32, #tpu.memory_space<vmem>>, vector<1x128xf32>
      tpu.vector_store %arg6[%c0_20, %c0_21], %58 {strides = array<i32>} : memref<1x128xf32, #tpu.memory_space<vmem>>, vector<1x128xf32>,
      %c0_22 = arith.constant 0 : index
      %60 = memref.load %arg7[%c0_22] : memref<2xf32, #tpu.memory_space<smem>>
      %61 = arith.addf %60, %24 : f32
      %c0_23 = arith.constant 0 : index
      %62 = memref.load %arg7[%c0_23] : memref<2xf32, #tpu.memory_space<smem>>
      memref.store %61, %arg7[%c0_23] : memref<2xf32, #tpu.memory_space<smem>>
      %c1 = arith.constant 1 : index
      %63 = memref.load %arg7[%c1] : memref<2xf32, #tpu.memory_space<smem>>
      %64 = arith.addf %63, %45 : f32
      %c1_24 = arith.constant 1 : index
      %65 = memref.load %arg7[%c1_24] : memref<2xf32, #tpu.memory_space<smem>>
      memref.store %64, %arg7[%c1_24] : memref<2xf32, #tpu.memory_space<smem>>
    } else {
    }
    %c0_i32_16 = arith.constant 0 : i32
    %54 = arith.cmpi eq, %arg1, %c0_i32_16 : i32
    %55 = arith.extui %54 : i1 to i32
    %c0_i32_17 = arith.constant 0 : i32
    %56 = arith.cmpi ne, %55, %c0_i32_17 : i32
    scf.if %56 {
      %c0_18 = arith.constant 0 : index
      %c0_19 = arith.constant 0 : index
      %57 = vector.load %arg6[%c0_18, %c0_19] : memref<1x128xf32, #tpu.memory_space<vmem>>, vector<1x128xf32>
      %c0_20 = arith.constant 0 : index
      %c0_21 = arith.constant 0 : index
      %c0_22 = arith.constant 0 : index
      %58 = vector.load %arg4[%c0_20, %c0_21, %c0_22] : memref<1x1x128xf32, #tpu.memory_space<vmem>>, vector<1x1x128xf32>
      %59 = vector.shape_cast %58 : vector<1x1x128xf32> to vector<1x128xf32>
      %60 = vector.shape_cast %57 : vector<1x128xf32> to vector<1x1x128xf32>
      tpu.vector_store %arg4[%c0_20, %c0_21, %c0_22], %60 {strides = array<i32>} : memref<1x1x128xf32, #tpu.memory_space<vmem>>, vector<1x1x128xf32>,
      %c0_23 = arith.constant 0 : index
      %61 = memref.load %arg7[%c0_23] : memref<2xf32, #tpu.memory_space<smem>>
      %c0_24 = arith.constant 0 : index
      %c0_25 = arith.constant 0 : index
      %62 = memref.load %arg5[%c0_24, %c0_25] : memref<1x2xf32, #tpu.memory_space<smem>>
      memref.store %61, %arg5[%c0_24, %c0_25] : memref<1x2xf32, #tpu.memory_space<smem>>
      %c1 = arith.constant 1 : index
      %63 = memref.load %arg7[%c1] : memref<2xf32, #tpu.memory_space<smem>>
      %c0_26 = arith.constant 0 : index
      %c1_27 = arith.constant 1 : index
      %64 = memref.load %arg5[%c0_26, %c1_27] : memref<1x2xf32, #tpu.memory_space<smem>>
      memref.store %63, %arg5[%c0_26, %c1_27] : memref<1x2xf32, #tpu.memory_space<smem>>
    } else {
    }
    return
  }
  func.func @transform_0(%arg0: i32, %arg1: i32) -> (i32, i32) {
    %c1_i32 = arith.constant 1 : i32
    %0 = arith.muli %arg0, %c1_i32 : i32
    %1 = arith.addi %0, %arg1 : i32
    %c0_i32 = arith.constant 0 : i32
    %c0_i32_0 = arith.constant 0 : i32
    return %1, %c0_i32 : i32, i32
  }
  func.func @transform_1(%arg0: i32, %arg1: i32) -> (i32, i32) {
    %c0_i32 = arith.constant 0 : i32
    %c0_i32_0 = arith.constant 0 : i32
    %c0_i32_1 = arith.constant 0 : i32
    return %c0_i32, %c0_i32_0 : i32, i32
  }
  func.func @transform_2(%arg0: i32, %arg1: i32) -> (i32, i32, i32) {
    %c0_i32 = arith.constant 0 : i32
    %c0_i32_0 = arith.constant 0 : i32
    %c0_i32_1 = arith.constant 0 : i32
    return %arg0, %c0_i32, %c0_i32_0 : i32, i32, i32
  }
  func.func @transform_3(%arg0: i32, %arg1: i32) -> (i32, i32) {
    %c0_i32 = arith.constant 0 : i32
    %c0_i32_0 = arith.constant 0 : i32
    return %arg0, %c0_i32 : i32, i32
  }
}

</mosaic_0001>

<bundles_post_ra>
// kernel: clip_loss.1
= control target key start
LH: loop header
LB: loop body
LE: loop exit
PB: predicated region body
PF: predicated region fallthrough
CT: control target
= control target key end

     0   :  { %s659_s0 = inlined_call_operand.vmem [shape: f32[128,128], index: 0, kind: input, shape index: {}]   ;;  %s660_s1 = inlined_call_operand.<no memory space> [shape: f32[1,1], index: 1, kind: input, shape index: {}]   ;;  %s661_s2 = inlined_call_operand.vmem [shape: f32[1,1,128], index: 2, kind: output, shape index: {0}]   ;;  %s662_s3 = inlined_call_operand.vmem [shape: f32[1,2], index: 3, kind: output, shape index: {1}]  }
   0x1   :  { %v39_v0 = vstv %s660_s1 }
   0x2   :  { %v40_v1 = vmul.f32 1.442695, %v39_v0 }
   0x4   :  { %512 = vpow2.f32 %v40_v1 }
   0x5   :  { %10 = vsyncpa [#allocation6], 0  ;;  %v189_v3 = vlaneseq  ;;  %v299_v4 = vld [vmem:[%s659_s0] sm:$0xff]  ;;  %v44_v5 = vld [vmem:[%s659_s0 + $0x8] sm:$0xff]  ;;  %vm255_vm1 = vcmask 7168   ;;  %s469_s20 = sshll.u32 %s662_s3, 4  ;;  %s470_s20 = int_to_ptr.vmem [resolvable:$true] %s469_s20 }
   0x6   :  { %v45_v6 = vld [vmem:[%s659_s0 + $0x10] sm:$0xff]  ;;  %v46_v9 = vld [vmem:[%s659_s0 + $0x18] sm:$0xff]  ;;  %v487_v10 = vadd.f32 -1.0, %v299_v4  ;;  %v488_v11 = vadd.f32 -1.0, %v44_v5  ;;  %v47_v13 = vld [vmem:[%s659_s0 + $0x20] sm:$0xff]  ;;  %s548_s23 = scalar_lea.vmem %s470_s20, 16  ;;  %p553_p1 = scmp.lt.s32.totalorder %s470_s20, %s470_s20 }
   0x7   :  { %v190_v7 = vshrl.u32 %v189_v3, 7  ;;  %v332_v8 = vand.u32 127, %v189_v3  ;;  %v489_v12 = vadd.f32 -1.0, %v45_v6  ;;  %v490_v15 = vadd.f32 -1.0, %v46_v9  ;;  %v48_v17 = vld [vmem:[%s659_s0 + $0x28] sm:$0xff]  ;;  %v49_v23 = vld [vmem:[%s659_s0 + $0x30] sm:$0xff]  ;;  %p549_p0 = scmp.ne.s32.totalorder %s470_s20, %s548_s23  ;;  %p554_p2 = scmp.lt.s32.totalorder %s548_s23, %s548_s23 }
   0x8   :  { %v491_v20 = vadd.f32 -1.0, %v47_v13  ;;  %v492_v24 = vadd.f32 -1.0, %v48_v17  ;;  %v50_v26 = vld [vmem:[%s659_s0 + $0x38] sm:$0xff]  ;;  %v493_v29 = vadd.f32 -1.0, %v49_v23  ;;  %v51_v32 = vld [vmem:[%s659_s0 + $0x40] sm:$0xff]  ;;  %v52_v36 = vld [vmem:[%s659_s0 + $0x48] sm:$0xff] }
   0x9   :  { %vm333_vm0 = vcmp.eq.s32.totalorder %v190_v7, %v332_v8  ;;  %v494_v33 = vadd.f32 -1.0, %v50_v26  ;;  %v495_v37 = vadd.f32 -1.0, %v51_v32  ;;  %v53_v40 = vld [vmem:[%s659_s0 + $0x50] sm:$0xff]  ;;  %v496_v41 = vadd.f32 -1.0, %v52_v36  ;;  %v54_v44 = vld [vmem:[%s659_s0 + $0x58] sm:$0xff]  ;;  %v55_v48 = vld [vmem:[%s659_s0 + $0x60] sm:$0xff]  ;;  %p555_p3 = por %p554_p2, %p553_p1 }
   0xa   :  { %v497_v45 = vadd.f32 -1.0, %v53_v40  ;;  %v498_v49 = vadd.f32 -1.0, %v54_v44  ;;  %v56_v53 = vld [vmem:[%s659_s0 + $0x68] sm:$0xff]  ;;  %v499_v55 = vadd.f32 -1.0, %v55_v48  ;;  %v57_v58 = vld [vmem:[%s659_s0 + $0x70] sm:$0xff]  ;;  %v58_v0 = vld [vmem:[%s659_s0 + $0x78] sm:$0xff] }
   0xb   :  { %v500_v61 = vadd.f32 -1.0, %v56_v53  ;;  %v501_v3 = vadd.f32 -1.0, %v57_v58  ;;  %v502_v8 = vadd.f32 -1.0, %v58_v0  ;;  %p556_p4 = pnand %p555_p3, %p549_p0 }
   0xe   :  { %v513_v2 = vpop.eup %512 }
   0xf   :  { %505 = vpush %v513_v2 }
  0x40   :  { %s506_s21 = spop %505 }
  0x41   :  { %v601_v14 = vstv %s506_s21 }
  0x42   :  { %v315_v16 = vmul.f32 %v299_v4, %v601_v14  ;;  %v76_v18 = vmul.f32 %v487_v10, %v601_v14  ;;  %v77_v19 = vmul.f32 %v488_v11, %v601_v14  ;;  %v78_v21 = vmul.f32 %v489_v12, %v601_v14 }
  0x43   :  { %v79_v25 = vmul.f32 %v490_v15, %v601_v14  ;;  %v80_v30 = vmul.f32 %v491_v20, %v601_v14  ;;  %v81_v34 = vmul.f32 %v492_v24, %v601_v14  ;;  %v82_v38 = vmul.f32 %v493_v29, %v601_v14 }
  0x44   :  { %v365_v22 = vsel %vm333_vm0, %v315_v16, 0.0  ;;  %v92_v27 = vmul.f32 1.442695, %v76_v18  ;;  %v94_v28 = vmul.f32 1.442695, %v77_v19  ;;  %v83_v42 = vmul.f32 %v494_v33, %v601_v14 }
  0x45   :  { %396 = vadd.xlane.f32.xlu1 %v365_v22  ;;  %v96_v31 = vmul.f32 1.442695, %v78_v21  ;;  %v98_v35 = vmul.f32 1.442695, %v79_v25  ;;  %v100_v39 = vmul.f32 1.442695, %v80_v30  ;;  %v84_v46 = vmul.f32 %v495_v37, %v601_v14 }
  0x46   :  { %514 = vpow2.f32 %v92_v27  ;;  %v102_v43 = vmul.f32 1.442695, %v81_v34  ;;  %v104_v47 = vmul.f32 1.442695, %v82_v38  ;;  %v85_v50 = vmul.f32 %v496_v41, %v601_v14 }
  0x47   :  { %516 = vpow2.f32 %v94_v28  ;;  %v106_v51 = vmul.f32 1.442695, %v83_v42  ;;  %v86_v56 = vmul.f32 %v497_v45, %v601_v14  ;;  %v108_v57 = vmul.f32 1.442695, %v84_v46 }
  0x48   :  { %518 = vpow2.f32 %v96_v31  ;;  %v87_v62 = vmul.f32 %v498_v49, %v601_v14  ;;  %v110_v63 = vmul.f32 1.442695, %v85_v50  ;;  %v88_v4 = vmul.f32 %v499_v55, %v601_v14 }
  0x49   :  { %520 = vpow2.f32 %v98_v35  ;;  %v112_v5 = vmul.f32 1.442695, %v86_v56  ;;  %v89_v9 = vmul.f32 %v500_v61, %v601_v14  ;;  %v90_v13 = vmul.f32 %v501_v3, %v601_v14 }
  0x4a   :  { %522 = vpow2.f32 %v100_v39  ;;  %v114_v10 = vmul.f32 1.442695, %v87_v62  ;;  %v116_v15 = vmul.f32 1.442695, %v88_v4  ;;  %v91_v18 = vmul.f32 %v502_v8, %v601_v14 }
  0x4b   :  { %524 = vpow2.f32 %v102_v43  ;;  %v118_v19 = vmul.f32 1.442695, %v89_v9  ;;  %v120_v22 = vmul.f32 1.442695, %v90_v13 }
  0x4c   :  { %526 = vpow2.f32 %v104_v47  ;;  %v122_v25 = vmul.f32 1.442695, %v91_v18 }
  0x4d   :  { %528 = vpow2.f32 %v106_v51 }
  0x4e   :  { %530 = vpow2.f32 %v108_v57 }
  0x4f   :  { %532 = vpow2.f32 %v110_v63 }
  0x50   :  { %v515_v52 = vpop.eup %514  ;;  %534 = vpow2.f32 %v112_v5 }
  0x51   :  { %v517_v54 = vpop.eup %516  ;;  %124 = vadd.xlane.f32.xlu0 %v515_v52  ;;  %536 = vpow2.f32 %v114_v10 }
  0x52   :  { %v405_v59 = vadd.f32 %v517_v54, %v515_v52  ;;  %v519_v60 = vpop.eup %518  ;;  %538 = vpow2.f32 %v116_v15 }
  0x53   :  { %v521_v2 = vpop.eup %520  ;;  %540 = vpow2.f32 %v118_v19 }
  0x54   :  { %v406_v1 = vadd.f32 %v519_v60, %v405_v59  ;;  %v523_v7 = vpop.eup %522  ;;  %542 = vpow2.f32 %v120_v22 }
  0x55   :  { %v525_v12 = vpop.eup %524  ;;  %544 = vpow2.f32 %v122_v25 }
  0x56   :  { %v407_v6 = vadd.f32 %v521_v2, %v406_v1  ;;  %v527_v17 = vpop.eup %526 }
  0x57   :  { %v529_v21 = vpop.eup %528 }
  0x58   :  { %v408_v11 = vadd.f32 %v523_v7, %v407_v6  ;;  %v531_v24 = vpop.eup %530 }
  0x59   :  { %v533_v27 = vpop.eup %532 }
  0x5a   :  { %v409_v16 = vadd.f32 %v525_v12, %v408_v11  ;;  %v535_v29 = vpop.eup %534 }
  0x5b   :  { %v537_v31 = vpop.eup %536 }
  0x5c   :  { %v410_v20 = vadd.f32 %v527_v17, %v409_v16  ;;  %v539_v14 = vpop.eup %538 }
  0x5d   :  { %v541_v34 = vpop.eup %540 }
  0x5e   :  { %v411_v23 = vadd.f32 %v529_v21, %v410_v20  ;;  %v543_v36 = vpop.eup %542 }
  0x5f   :  { %v545_v38 = vpop.eup %544 }
  0x60   :  { %v412_v26 = vadd.f32 %v531_v24, %v411_v23 }
  0x62   :  { %v413_v28 = vadd.f32 %v533_v27, %v412_v26 }
  0x64   :  { %v414_v30 = vadd.f32 %v535_v29, %v413_v28 }
  0x66   :  { %v415_v32 = vadd.f32 %v537_v31, %v414_v30 }
  0x68   :  { %v416_v33 = vadd.f32 %v539_v14, %v415_v32 }
  0x6a   :  { %v417_v35 = vadd.f32 %v541_v34, %v416_v33 }
  0x6c   :  { %v418_v37 = vadd.f32 %v543_v36, %v417_v35 }
  0x6e   :  { %v419_v39 = vadd.f32 %v545_v38, %v418_v37 }
  0x70   :  { %v420_v40 = vrot.slane %v419_v39, 4 }
  0x72   :  { %v421_v41 = vadd.f32 %v420_v40, %v419_v39 }
  0x74   :  { %v422_v42 = vrot.slane %v421_v41, 2 }
  0x76   :  { %v423_v43 = vadd.f32 %v422_v42, %v421_v41 }
  0x78   :  { %v424_v44 = vrot.slane %v423_v43, 1 }
  0x7a   :  { %v425_v45 = vadd.f32 %v424_v44, %v423_v43 }
  0x7c   :  { %430 = vst [vmem:[#allocation2] sm:$0x1] %v425_v45 }
  0x83   :  { %v453_v46 = vld [vmem:[#allocation2] sm:$0x1] }
  0x84   :  { %454 = vst [vmem:[%s661_s2] sm:$0x1] %v453_v46 }
  0xd2   :  { %v397_v51 = vpop.xlane.xlu1 %396 }
  0xd3   :  { %v398_v52 = vrot.slane %v397_v51, 4 }
  0xd5   :  { %v399_v53 = vadd.f32 %v398_v52, %v397_v51 }
  0xd7   :  { %v400_v54 = vrot.slane %v399_v53, 2 }
  0xd9   :  { %v401_v58 = vadd.f32 %v400_v54, %v399_v53 }
  0xdb   :  { %v402_v61 = vrot.slane %v401_v58, 1 }
  0xdd   :  { %v403_v0 = vadd.f32 %v402_v61, %v401_v58 }
  0xde   :  { %v125_v47 = vpop.xlane.xlu0 %124 }
  0xdf   :  { %546 = vlog2.f32 %v125_v47 }
  0xe9   :  { %v547_v48 = vpop.eup %546 }
  0xea   :  { %v157_v49 = vmul.f32 0.6931472, %v547_v48 }
  0xec   :  { %v256_v50 = vsel %vm255_vm1, %v157_v49, 0.0 }
  0xed   :  { %287 = vadd.xlane.f32.xlu0 %v256_v50 }
 0x17a   :  { %v288_v55 = vpop.xlane.xlu0 %287 }
 0x17b   :  { %v289_v56 = vrot.slane %v288_v55, 4 }
 0x17d   :  { %v290_v57 = vadd.f32 %v289_v56, %v288_v55 }
 0x17f   :  { %v291_v59 = vrot.slane %v290_v57, 2 }
 0x181   :  { %v292_v60 = vadd.f32 %v291_v59, %v290_v57 }
 0x183   :  { %v293_v62 = vrot.slane %v292_v60, 1 }
 0x185   :  { %v294_v63 = vadd.f32 %v293_v62, %v292_v60 }
 0x187   :  { %507 = vpush %v294_v63 }
 0x188   :  { %509 = vpush %v403_v0 }
 0x1b8   :  { %s508_s21 = spop %507 }
 0x1b9   :  { %457 = sst [smem:[#allocation5]] %s508_s21  ;;  %s510_s22 = spop %509 }
 0x1ba   :  { %460 = sst [smem:[#allocation5 + $0x1]] %s510_s22 }
 0x1bb   :  { %559 = shalt.err (!%p556_p4)
}
 0x1bc   :  { %s562_s24 = smov [#allocation5]  }
 0x1bd   :  { %472 = dma.smem_to_vmem %s562_s24, 16, %s470_s20, [#allocation6]  }
 0x1be   :  { %560 = dma.done.wait [#allocation6], 16  }
 0x1bf   :  { %561 = vsyncadd [#allocation6], 4294967280 }
 0x1c0   :  { %478 = sfence }
 0x1c1   :  { %479 = vsyncpa [#allocation6], 1 }

</bundles_post_ra>
